<compile_context>
chip_gen: v5e
topology: v5e:2x2
jax: 0.10.0
libtpu: 0.0.40
codegen_flags: <defaults>
</compile_context>

<pallas_src>
import functools

import jax
import jax.numpy as jnp
from jax.experimental import pallas as pl
from jax.experimental.pallas import tpu as pltpu

F32 = jnp.float32
BF16 = jnp.bfloat16
LANE = 128      # pad feature dims to a multiple of the TPU lane width
SUBLANE = 8


# ---------------------------------------------------------------------------
# helpers
# ---------------------------------------------------------------------------
def _round_up(x, m):
    return ((x + m - 1) // m) * m


def _pad2(a, rows, cols, dtype=F32):
    r, c = a.shape
    return jnp.pad(a.astype(F32), ((0, rows - r), (0, cols - c))).astype(dtype)


def _device_kind():
    try:
        return jax.devices()[0].device_kind.lower()
    except Exception:
        return ""


def _is_v7x():
    dk = _device_kind()
    return ("v7" in dk) or ("7x" in dk)


def _vmem_capacity_bytes():
    try:
        return int(pltpu.get_tpu_info().vmem_capacity_bytes)
    except Exception:
        return 64 * 2**20   # conservative default (v7x per-core VMEM)


@functools.cache
def _supports_single_buffering():
    """Probe once whether pipeline_mode=pl.Buffered(1) is accepted by this JAX."""
    try:
        def k(x_ref, o_ref):
            o_ref[...] = x_ref[...]
        x = jnp.zeros((SUBLANE, LANE), F32)
        out = pl.pallas_call(
            k,
            out_shape=jax.ShapeDtypeStruct((SUBLANE, LANE), F32),
            grid=(1,),
            in_specs=[pl.BlockSpec((SUBLANE, LANE), lambda i: (0, 0),
                                   pipeline_mode=pl.Buffered(1))],
            out_specs=pl.BlockSpec((SUBLANE, LANE), lambda i: (0, 0)),
        )(x)
        jax.block_until_ready(out)
        return True
    except Exception:
        return False


# ---------------------------------------------------------------------------
# VMEM budgeting / tile-size policy
# ---------------------------------------------------------------------------
def _stack_weight_bytes(din, dh, num_layer, h_is_zero):
    din_p = _round_up(din, LANE)
    b = din_p * dh * 2 + SUBLANE * dh * 4                 # emb_w (bf16) + emb_b (f32)
    b += num_layer * dh * (3 * dh) * 2                    # fused wx (bf16)
    b += num_layer * SUBLANE * (3 * dh) * 4               # fused gate bias (f32)
    if not h_is_zero:
        b += num_layer * dh * (2 * dh) * 2                # fused wh (bf16)
        b += num_layer * dh * dh * 2                      # whh (bf16)
    return b


def _stack_vmem_bytes(tile_n, din, dh, num_layer, h_is_zero, single_buf):
    din_p = _round_up(din, LANE)
    w = (1 if single_buf else 2) * _stack_weight_bytes(din, dh, num_layer, h_is_zero)
    act = 2 * tile_n * din_p * 4 + 2 * tile_n * dh * 4    # x-in + out (double-buffered)
    if not h_is_zero:
        act += 2 * tile_n * dh * 4                        # h-in (double-buffered)
    tmp = tile_n * (3 * dh + 2 * dh + 3 * dh) * 4         # gx/gh/z/r/h_t live set (rough)
    return w + act + tmp


def _stack_vmem_limit(tile_n, din, dh, num_layer, h_is_zero, single_buf):
    need = _stack_vmem_bytes(tile_n, din, dh, num_layer, h_is_zero, single_buf)
    cap = int(0.9 * _vmem_capacity_bytes())
    return int(min(cap, max(int(1.5 * need) + (4 << 20), 16 << 20)))


def _choose_tile_n(n_rows, din, dh, num_layer, h_is_zero):
    # 512-row tiles spill the gate live-set hard (v5e has 1 vst slot); cap at 256.
    # Only force >=2 row tiles on v7x (2 TensorCores); single-TC v5e/v6e get one
    # big tile when N is small enough, shrunk only if the VMEM estimate overflows.
    cap = 256
    n8 = _round_up(max(n_rows, 1), SUBLANE)
    if _is_v7x() and n8 > SUBLANE:
        t = _round_up((n8 + 1) // 2, SUBLANE)
    else:
        t = n8
    t = max(SUBLANE, min(cap, t))
    budget = int(0.75 * _vmem_capacity_bytes())
    while t > SUBLANE and _stack_vmem_bytes(t, din, dh, num_layer, h_is_zero,
                                            False) > budget:
        t = _round_up(t // 2, SUBLANE)
    return t


# ---------------------------------------------------------------------------
# Fused kernel: node_embedding + num_layer GConvGRU(K=1) cells + ReLU post
# ---------------------------------------------------------------------------
def _make_stack_kernel(num_layer, dh, h_is_zero):
    """dh is the PADDED hidden dim (multiple of 128) -> gate slices are lane-aligned.

    Fused weights:  wx = [wxz|wxr|wxh] (dh,3dh) bf16,  wh = [whz|whr] (dh,2dh) bf16,
                    whh (dh,dh) bf16, b = [bz|br|bh] (1,3dh) f32 (conv_x_* and
                    conv_h_* biases always add, so they are pre-summed).
    Matmuls run bf16 x bf16 -> f32 on the MXU; gate / elementwise math stays f32.
    """
    if h_is_zero:
        # H == 0  =>  Z*H == 0 and (H*R)@Whh == 0: all H-side matmuls skipped.
        def kernel(x_ref, emb_w_ref, emb_b_ref, wx_ref, b_ref, o_ref):
            x = jnp.maximum(
                jnp.dot(x_ref[...].astype(BF16), emb_w_ref[...],
                        preferred_element_type=F32) + emb_b_ref[...], 0.0)
            for l in range(num_layer):
                gx = jnp.dot(x.astype(BF16), wx_ref[l],
                             preferred_element_type=F32) + b_ref[l]
                z = jax.nn.sigmoid(gx[:, :dh])
                h_t = jnp.tanh(gx[:, 2 * dh:])
                x = jnp.maximum((1.0 - z) * h_t, 0.0)   # ReLU post_layer
            o_ref[...] = x.astype(o_ref.dtype)
    else:
        def kernel(x_ref, h_ref, emb_w_ref, emb_b_ref, wx_ref, wh_ref, whh_ref,
                   b_ref, o_ref):
            x = jnp.maximum(
                jnp.dot(x_ref[...].astype(BF16), emb_w_ref[...],
                        preferred_element_type=F32) + emb_b_ref[...], 0.0)
            h = h_ref[...].astype(F32)
            h_bf = h.astype(BF16)        # same external H feeds every layer
            for l in range(num_layer):
                gx = jnp.dot(x.astype(BF16), wx_ref[l],
                             preferred_element_type=F32) + b_ref[l]
                gh = jnp.dot(h_bf, wh_ref[l], preferred_element_type=F32)
                z = jax.nn.sigmoid(gx[:, :dh] + gh[:, :dh])
                r = jax.nn.sigmoid(gx[:, dh:2 * dh] + gh[:, dh:])
                h_t = jnp.tanh(
                    gx[:, 2 * dh:]
                    + jnp.dot((h * r).astype(BF16), whh_ref[l],
                              preferred_element_type=F32))
                x = jnp.maximum(z * h + (1.0 - z) * h_t, 0.0)
            o_ref[...] = x.astype(o_ref.dtype)
    return kernel


def gcrn_stack(x_pad, h_pad, packed, *, tile_n, single_buf):
    """x_pad: (N_pad, Din); h_pad: (N_pad, dh_pad) or None -> (N_pad, dh_pad)."""
    n_pad, din = x_pad.shape
    dh = packed["emb_w"].shape[1]
    num_layer = int(packed["wx"].shape[0])
    grid = (n_pad // tile_n,)
    h_is_zero = h_pad is None

    def const_spec(shape):
        ndim = len(shape)
        idx = (lambda i: (0,) * ndim)
        if single_buf:
            # constant block index across the grid -> one VMEM buffer, one DMA
            return pl.BlockSpec(shape, idx, pipeline_mode=pl.Buffered(1))
        return pl.BlockSpec(shape, idx)

    row_in = pl.BlockSpec((tile_n, din), lambda i: (i, 0))
    row_h = pl.BlockSpec((tile_n, dh), lambda i: (i, 0))

    kernel = _make_stack_kernel(num_layer, dh, h_is_zero)

    in_specs = [row_in]
    args = [x_pad]
    io_alias = {}
    if not h_is_zero:
        in_specs.append(row_h)
        args.append(h_pad)
        io_alias = {1: 0}   # reuse H's HBM buffer for the output (same shape/dtype)
    in_specs += [const_spec(packed["emb_w"].shape), const_spec(packed["emb_b"].shape),
                 const_spec(packed["wx"].shape)]
    args += [packed["emb_w"], packed["emb_b"], packed["wx"]]
    if not h_is_zero:
        in_specs += [const_spec(packed["wh"].shape), const_spec(packed["whh"].shape)]
        args += [packed["wh"], packed["whh"]]
    in_specs.append(const_spec(packed["b"].shape))
    args.append(packed["b"])

    vmem_limit = _stack_vmem_limit(tile_n, din, dh, num_layer, h_is_zero, single_buf)

    # TODO(synk): for dh_pad >= 512 with many layers, add an inner "arbitrary" grid
    # axis over layers (weights indexed by l, activation carried in a VMEM scratch
    # initialised under pl.when(l == 0)) so only one layer's weights are resident.
    return pl.pallas_call(
        kernel,
        out_shape=jax.ShapeDtypeStruct((n_pad, dh), F32),
        grid=grid,
        in_specs=in_specs,
        out_specs=row_h,
        input_output_aliases=io_alias,
        compiler_params=pltpu.CompilerParams(
            dimension_semantics=("parallel",),
            vmem_limit_bytes=vmem_limit),
    )(*args)


# ---------------------------------------------------------------------------
# LinkDecoder: (h_src * h_dst) @ W + b, batched over edge tiles
# ---------------------------------------------------------------------------
# TODO(synk): LinkDecoder was not provided in the source module; assuming the
# standard Hadamard-product + Linear(hidden_dim, dim_out) decoder.
def _decoder_kernel(hs_ref, hd_ref, w_ref, b_ref, o_ref):
    prod = hs_ref[...] * hd_ref[...]                       # (TE, dh) f32 on the VPU
    out = jnp.dot(prod.astype(BF16), w_ref[...],
                  preferred_element_type=F32) + b_ref[...]
    o_ref[...] = out.astype(o_ref.dtype)


def link_decoder(h_src, h_dst, dec_w, dec_b, *, tile_e, single_buf):
    e_pad, dh = h_src.shape
    dout_pad = dec_w.shape[1]
    grid = (e_pad // tile_e,)

    def const_spec(shape):
        if single_buf:
            return pl.BlockSpec(shape, lambda i: (0, 0), pipeline_mode=pl.Buffered(1))
        return pl.BlockSpec(shape, lambda i: (0, 0))

    row = pl.BlockSpec((tile_e, dh), lambda i: (i, 0))
    return pl.pallas_call(
        _decoder_kernel,
        out_shape=jax.ShapeDtypeStruct((e_pad, dout_pad), F32),
        grid=grid,
        in_specs=[row, row, const_spec(dec_w.shape), const_spec(dec_b.shape)],
        out_specs=pl.BlockSpec((tile_e, dout_pad), lambda i: (i, 0)),
        compiler_params=pltpu.CompilerParams(dimension_semantics=("parallel",)),
    )(h_src, h_dst, dec_w, dec_b)


# ---------------------------------------------------------------------------
# Parameter packing (gate fusion + lane padding + bf16 weights)
# ---------------------------------------------------------------------------
def _pack_params(params, dh_pad, dout_pad):
    din = params["emb_w"].shape[0]
    packed = {
        "emb_w": _pad2(params["emb_w"], din, dh_pad, BF16),
        "emb_b": _pad2(params["emb_b"], 1, dh_pad, F32),
        "dec_w": _pad2(params["dec_w"], dh_pad, dout_pad, BF16),
        "dec_b": _pad2(params["dec_b"], 1, dout_pad, F32),
    }
    wx, wh, whh, b = [], [], [], []
    for p in params["layers"]:
        pw = lambda a: _pad2(a, dh_pad, dh_pad, BF16)
        pb = lambda a: _pad2(a, 1, dh_pad, F32)
        wx.append(jnp.concatenate([pw(p["wxz"]), pw(p["wxr"]), pw(p["wxh"])], axis=1))
        wh.append(jnp.concatenate([pw(p["whz"]), pw(p["whr"])], axis=1))
        whh.append(pw(p["whh"]))
        b.append(jnp.concatenate([pb(p["bz"]), pb(p["br"]), pb(p["bh"])], axis=1))
    packed["wx"] = jnp.stack(wx)     # (L, dh_pad, 3*dh_pad) bf16
    packed["wh"] = jnp.stack(wh)     # (L, dh_pad, 2*dh_pad) bf16
    packed["whh"] = jnp.stack(whh)   # (L, dh_pad, dh_pad)   bf16
    packed["b"] = jnp.stack(b)       # (L, 1, 3*dh_pad)      f32
    return packed


# ---------------------------------------------------------------------------
# GCRN forward
# ---------------------------------------------------------------------------
def gcrn_forward(params, x, edge_label_index, H=None, *, tile_n=None):
    # Probe (eagerly, outside jit) whether single-buffered constant BlockSpecs
    # are available; the boolean is a static compile flag.
    single_buf = _supports_single_buffering()
    return _gcrn_forward(params, x, edge_label_index, H,
                         tile_n=tile_n, single_buf=single_buf)


@functools.partial(jax.jit, static_argnames=("tile_n", "single_buf"))
def _gcrn_forward(params, x, edge_label_index, H, *, tile_n, single_buf):
    n, din = x.shape
    dh = params["emb_w"].shape[1]
    dout = params["dec_w"].shape[1]
    dh_pad = _round_up(dh, LANE)
    dout_pad = _round_up(dout, LANE)
    num_layer = len(params["layers"])
    h_is_zero = H is None

    if tile_n is None:
        tile_n = _choose_tile_n(n, din, dh_pad, num_layer, h_is_zero)
    n_pad = _round_up(n, tile_n)

    packed = _pack_params(params, dh_pad, dout_pad)

    x_pad = jnp.pad(x.astype(F32), ((0, n_pad - n), (0, 0)))
    h_pad = None
    if not h_is_zero:
        h_pad = jnp.pad(H.astype(F32), ((0, n_pad - n), (0, dh_pad - dh)))

    # embedding + all stacked GConvGRU layers in ONE fused kernel
    h_out_pad = gcrn_stack(x_pad, h_pad, packed, tile_n=tile_n, single_buf=single_buf)

    # LinkDecoder, batched over edge tiles.  The (src, dst) row gather is done by
    # an XLA take so the Pallas kernel runs full-height MXU matmuls per tile.
    src = edge_label_index[0].astype(jnp.int32)
    dst = edge_label_index[1].astype(jnp.int32)
    e = src.shape[0]
    tile_e = min(128, _round_up(e, SUBLANE))
    e_pad = _round_up(e, tile_e)
    src_p = jnp.pad(src, (0, e_pad - e))
    dst_p = jnp.pad(dst, (0, e_pad - e))
    h_src = jnp.take(h_out_pad, src_p, axis=0)
    h_dst = jnp.take(h_out_pad, dst_p, axis=0)

    pred_pad = link_decoder(h_src, h_dst, packed["dec_w"], packed["dec_b"],
                            tile_e=tile_e, single_buf=single_buf)

    prediction = pred_pad[:e, :dout]
    return prediction, h_out_pad[:n, :dh]


# ---------------------------------------------------------------------------
# Pure-JAX reference (for correctness check)
# ---------------------------------------------------------------------------
def gcrn_reference(params, x, edge_label_index, H=None):
    x = jnp.maximum(x @ params["emb_w"] + params["emb_b"], 0.0)
    n, dh = x.shape
    if H is None:
        H = jnp.zeros((n, dh), F32)
    for p in params["layers"]:
        z = jax.nn.sigmoid(x @ p["wxz"] + H @ p["whz"] + p["bz"])
        r = jax.nn.sigmoid(x @ p["wxr"] + H @ p["whr"] + p["br"])
        ht = jnp.tanh(x @ p["wxh"] + (H * r) @ p["whh"] + p["bh"])
        x = jnp.maximum(z * H + (1.0 - z) * ht, 0.0)
    src = x[edge_label_index[0]]
    dst = x[edge_label_index[1]]
    pred = (src * dst) @ params["dec_w"] + params["dec_b"]
    return pred, x


# ---------------------------------------------------------------------------
# Deterministic parameter init
# ---------------------------------------------------------------------------
def init_params(key, dim_in, hidden_dim, dim_out, num_layer):
    def nrm(k, shape, scale=0.2):
        return (scale * jax.random.normal(k, shape)).astype(F32)

    keys = jax.random.split(key, 4 + num_layer)
    params = {
        "emb_w": nrm(keys[0], (dim_in, hidden_dim)),
        "emb_b": nrm(keys[1], (1, hidden_dim)),
        "dec_w": nrm(keys[2], (hidden_dim, dim_out)),
        "dec_b": nrm(keys[3], (1, dim_out)),
        "layers": [],
    }
    for li in range(num_layer):
        lk = jax.random.split(keys[4 + li], 9)
        params["layers"].append({
            "wxz": nrm(lk[0], (hidden_dim, hidden_dim)),
            "whz": nrm(lk[1], (hidden_dim, hidden_dim)),
            "wxr": nrm(lk[2], (hidden_dim, hidden_dim)),
            "whr": nrm(lk[3], (hidden_dim, hidden_dim)),
            "wxh": nrm(lk[4], (hidden_dim, hidden_dim)),
            "whh": nrm(lk[5], (hidden_dim, hidden_dim)),
            # ChebConv biases of conv_x_* and conv_h_* always add -> pre-fused
            "bz": nrm(lk[6], (1, hidden_dim)),
            "br": nrm(lk[7], (1, hidden_dim)),
            "bh": nrm(lk[8], (1, hidden_dim)),
        })
    return params


if __name__ == "__main__":
    # Small shapes: 64 nodes, dim_in=8, hidden=32, dim_out=4, 2 layers, 16 edges
    N, DIM_IN, HIDDEN, DIM_OUT, NUM_LAYER, E = 64, 8, 32, 4, 2, 16

    key = jax.random.PRNGKey(0)
    k_param, k_x, k_ei, k_eli, k_h = jax.random.split(key, 5)

    params = init_params(k_param, DIM_IN, HIDDEN, DIM_OUT, NUM_LAYER)
    x = jax.random.normal(k_x, (N, DIM_IN), dtype=F32)
    # edge_index is unused when K=1 (ChebConv degenerates to Linear); API parity only
    edge_index = jax.random.randint(k_ei, (2, 96), 0, N, dtype=jnp.int32)
    edge_label_index = jax.random.randint(k_eli, (2, E), 0, N, dtype=jnp.int32)

    # bf16 weights on the MXU -> relaxed tolerance vs the f32 reference
    TOL = dict(atol=3e-2, rtol=3e-2)

    # Path 1: H=None (zero initial hidden state -> H-side matmuls skipped in-kernel)
    prediction, h_out = gcrn_forward(params, x, edge_label_index, H=None)
    jax.block_until_ready((prediction, h_out))
    ref_pred, ref_h = gcrn_reference(params, x, edge_label_index, H=None)
    assert prediction.shape == (E, DIM_OUT) and h_out.shape == (N, HIDDEN)
    assert jnp.allclose(prediction, ref_pred, **TOL)
    assert jnp.allclose(h_out, ref_h, **TOL)

    # Path 2: explicit recurrent state H (full GRU cell path, H aliased to output)
    H0 = jnp.abs(jax.random.normal(k_h, (N, HIDDEN), dtype=F32))
    prediction2, h_out2 = gcrn_forward(params, x, edge_label_index, H=H0)
    jax.block_until_ready((prediction2, h_out2))
    ref_pred2, ref_h2 = gcrn_reference(params, x, edge_label_index, H=H0)
    assert jnp.allclose(prediction2, ref_pred2, **TOL)
    assert jnp.allclose(h_out2, ref_h2, **TOL)

    print("KERNEL_OK")
</pallas_src>

<mosaic_0001>
module attributes {stable_mosaic.version = 11 : i64} {
  func.func @k(%arg0: i32, %arg1: memref<8x128xf32, #tpu.memory_space<vmem>>, %arg2: memref<8x128xf32, #tpu.memory_space<vmem>>) attributes {dimension_semantics = [#tpu.dimension_semantics<arbitrary>], iteration_bounds = array<i64: 1>, scalar_prefetch = 0 : i64, scratch_operands = 0 : i64, tpu.core_type = #tpu.core_type<tc>, window_params = [{pipeline_mode = #tpu.pipeline_mode<synchronous>, transform_indices = @transform_0, window_bounds = array<i64: 8, 128>}, {pipeline_mode = #tpu.pipeline_mode<synchronous>, transform_indices = @transform_1, window_bounds = array<i64: 8, 128>}]} {
    %c0 = arith.constant 0 : index
    %c0_0 = arith.constant 0 : index
    %0 = vector.load %arg1[%c0, %c0_0] : memref<8x128xf32, #tpu.memory_space<vmem>>, vector<8x128xf32>
    %c0_1 = arith.constant 0 : index
    %c0_2 = arith.constant 0 : index
    %1 = vector.load %arg2[%c0_1, %c0_2] : memref<8x128xf32, #tpu.memory_space<vmem>>, vector<8x128xf32>
    tpu.vector_store %arg2[%c0_1, %c0_2], %0 {strides = array<i32>} : memref<8x128xf32, #tpu.memory_space<vmem>>, vector<8x128xf32>,
    return
  }
  func.func @transform_0(%arg0: i32) -> (i32, i32) {
    %c0_i32 = arith.constant 0 : i32
    %c0_i32_0 = arith.constant 0 : i32
    %c0_i32_1 = arith.constant 0 : i32
    return %c0_i32, %c0_i32_0 : i32, i32
  }
  func.func @transform_1(%arg0: i32) -> (i32, i32) {
    %c0_i32 = arith.constant 0 : i32
    %c0_i32_0 = arith.constant 0 : i32
    %c0_i32_1 = arith.constant 0 : i32
    return %c0_i32, %c0_i32_0 : i32, i32
  }
}

module attributes {stable_mosaic.version = 11 : i64} {
  func.func @_decoder_kernel(%arg0: i32, %arg1: memref<16x128xf32, #tpu.memory_space<vmem>>, %arg2: memref<16x128xf32, #tpu.memory_space<vmem>>, %arg3: memref<128x128xbf16, #tpu.memory_space<vmem>>, %arg4: memref<1x128xf32, #tpu.memory_space<vmem>>, %arg5: memref<16x128xf32, #tpu.memory_space<vmem>>) attributes {dimension_semantics = [#tpu.dimension_semantics<parallel>], iteration_bounds = array<i64: 1>, scalar_prefetch = 0 : i64, scratch_operands = 0 : i64, tpu.core_type = #tpu.core_type<tc>, window_params = [{transform_indices = @transform_0, window_bounds = array<i64: 16, 128>}, {transform_indices = @transform_1, window_bounds = array<i64: 16, 128>}, {pipeline_mode = #tpu.pipeline_mode<synchronous>, transform_indices = @transform_2, window_bounds = array<i64: 128, 128>}, {pipeline_mode = #tpu.pipeline_mode<synchronous>, transform_indices = @transform_3, window_bounds = array<i64: 1, 128>}, {transform_indices = @transform_4, window_bounds = array<i64: 16, 128>}]} {
    %c0 = arith.constant 0 : index
    %c0_0 = arith.constant 0 : index
    %0 = vector.load %arg1[%c0, %c0_0] : memref<16x128xf32, #tpu.memory_space<vmem>>, vector<16x128xf32>
    %c0_1 = arith.constant 0 : index
    %c0_2 = arith.constant 0 : index
    %1 = vector.load %arg2[%c0_1, %c0_2] : memref<16x128xf32, #tpu.memory_space<vmem>>, vector<16x128xf32>
    %2 = arith.mulf %0, %1 : vector<16x128xf32>
    %3 = arith.truncf %2 : vector<16x128xf32> to vector<16x128xbf16>
    %c0_3 = arith.constant 0 : index
    %c0_4 = arith.constant 0 : index
    %4 = vector.load %arg3[%c0_3, %c0_4] : memref<128x128xbf16, #tpu.memory_space<vmem>>, vector<128x128xbf16>
    %cst = arith.constant dense<0.000000e+00> : vector<16x128xf32>
    %5 = tpu.matmul %3, %4, %cst {dimension_numbers = #tpu.dot_dimension_numbers<[1], [0], [0], [1], [0, 0, 1, 1], [], []>} : vector<16x128xbf16>, vector<128x128xbf16>, vector<16x128xf32> -> vector<16x128xf32>
    %c0_5 = arith.constant 0 : index
    %c0_6 = arith.constant 0 : index
    %6 = vector.load %arg4[%c0_5, %c0_6] : memref<1x128xf32, #tpu.memory_space<vmem>>, vector<1x128xf32>
    %7 = vector.broadcast %6 : vector<1x128xf32> to vector<16x128xf32>
    %8 = arith.addf %5, %7 : vector<16x128xf32>
    %c0_7 = arith.constant 0 : index
    %c0_8 = arith.constant 0 : index
    %9 = vector.load %arg5[%c0_7, %c0_8] : memref<16x128xf32, #tpu.memory_space<vmem>>, vector<16x128xf32>
    tpu.vector_store %arg5[%c0_7, %c0_8], %8 {strides = array<i32>} : memref<16x128xf32, #tpu.memory_space<vmem>>, vector<16x128xf32>,
    return
  }
  func.func @transform_0(%arg0: i32) -> (i32, i32) {
    %c0_i32 = arith.constant 0 : i32
    %c0_i32_0 = arith.constant 0 : i32
    return %arg0, %c0_i32 : i32, i32
  }
  func.func @transform_1(%arg0: i32) -> (i32, i32) {
    %c0_i32 = arith.constant 0 : i32
    %c0_i32_0 = arith.constant 0 : i32
    return %arg0, %c0_i32 : i32, i32
  }
  func.func @transform_2(%arg0: i32) -> (i32, i32) {
    %c0_i32 = arith.constant 0 : i32
    %c0_i32_0 = arith.constant 0 : i32
    %c0_i32_1 = arith.constant 0 : i32
    return %c0_i32, %c0_i32_0 : i32, i32
  }
  func.func @transform_3(%arg0: i32) -> (i32, i32) {
    %c0_i32 = arith.constant 0 : i32
    %c0_i32_0 = arith.constant 0 : i32
    %c0_i32_1 = arith.constant 0 : i32
    return %c0_i32, %c0_i32_0 : i32, i32
  }
  func.func @transform_4(%arg0: i32) -> (i32, i32) {
    %c0_i32 = arith.constant 0 : i32
    %c0_i32_0 = arith.constant 0 : i32
    return %arg0, %c0_i32 : i32, i32
  }
}

module attributes {stable_mosaic.version = 11 : i64} {
  func.func @kernel(%arg0: i32, %arg1: memref<64x8xf32, #tpu.memory_space<vmem>>, %arg2: memref<8x128xbf16, #tpu.memory_space<vmem>>, %arg3: memref<1x128xf32, #tpu.memory_space<vmem>>, %arg4: memref<2x128x384xbf16, #tpu.memory_space<vmem>>, %arg5: memref<2x1x384xf32, #tpu.memory_space<vmem>>, %arg6: memref<64x128xf32, #tpu.memory_space<vmem>>) attributes {dimension_semantics = [#tpu.dimension_semantics<parallel>], iteration_bounds = array<i64: 1>, scalar_prefetch = 0 : i64, scratch_operands = 0 : i64, tpu.core_type = #tpu.core_type<tc>, window_params = [{transform_indices = @transform_0, window_bounds = array<i64: 64, 8>}, {pipeline_mode = #tpu.pipeline_mode<synchronous>, transform_indices = @transform_1, window_bounds = array<i64: 8, 128>}, {pipeline_mode = #tpu.pipeline_mode<synchronous>, transform_indices = @transform_2, window_bounds = array<i64: 1, 128>}, {pipeline_mode = #tpu.pipeline_mode<synchronous>, transform_indices = @transform_3, window_bounds = array<i64: 2, 128, 384>}, {pipeline_mode = #tpu.pipeline_mode<synchronous>, transform_indices = @transform_4, window_bounds = array<i64: 2, 1, 384>}, {transform_indices = @transform_5, window_bounds = array<i64: 64, 128>}]} {
    %c0 = arith.constant 0 : index
    %c0_0 = arith.constant 0 : index
    %0 = vector.load %arg1[%c0, %c0_0] : memref<64x8xf32, #tpu.memory_space<vmem>>, vector<64x8xf32>
    %1 = arith.truncf %0 : vector<64x8xf32> to vector<64x8xbf16>
    %c0_1 = arith.constant 0 : index
    %c0_2 = arith.constant 0 : index
    %2 = vector.load %arg2[%c0_1, %c0_2] : memref<8x128xbf16, #tpu.memory_space<vmem>>, vector<8x128xbf16>
    %cst = arith.constant dense<0.000000e+00> : vector<64x128xf32>
    %3 = tpu.matmul %1, %2, %cst {dimension_numbers = #tpu.dot_dimension_numbers<[1], [0], [0], [1], [0, 0, 1, 1], [], []>} : vector<64x8xbf16>, vector<8x128xbf16>, vector<64x128xf32> -> vector<64x128xf32>
    %c0_3 = arith.constant 0 : index
    %c0_4 = arith.constant 0 : index
    %4 = vector.load %arg3[%c0_3, %c0_4] : memref<1x128xf32, #tpu.memory_space<vmem>>, vector<1x128xf32>
    %5 = vector.broadcast %4 : vector<1x128xf32> to vector<64x128xf32>
    %6 = arith.addf %3, %5 : vector<64x128xf32>
    %cst_5 = arith.constant 0.000000e+00 : f32
    %7 = vector.broadcast %cst_5 : f32 to vector<64x128xf32>
    %8 = arith.maximumf %6, %7 : vector<64x128xf32>
    %9 = arith.truncf %8 : vector<64x128xf32> to vector<64x128xbf16>
    %c0_6 = arith.constant 0 : index
    %c0_7 = arith.constant 0 : index
    %c0_8 = arith.constant 0 : index
    %10 = vector.load %arg4[%c0_6, %c0_7, %c0_8] : memref<2x128x384xbf16, #tpu.memory_space<vmem>>, vector<1x128x384xbf16>
    %11 = vector.shape_cast %10 : vector<1x128x384xbf16> to vector<128x384xbf16>
    %cst_9 = arith.constant dense<0.000000e+00> : vector<64x384xf32>
    %12 = tpu.matmul %9, %11, %cst_9 {dimension_numbers = #tpu.dot_dimension_numbers<[1], [0], [0], [1], [0, 0, 1, 1], [], []>} : vector<64x128xbf16>, vector<128x384xbf16>, vector<64x384xf32> -> vector<64x384xf32>
    %c0_10 = arith.constant 0 : index
    %c0_11 = arith.constant 0 : index
    %c0_12 = arith.constant 0 : index
    %13 = vector.load %arg5[%c0_10, %c0_11, %c0_12] : memref<2x1x384xf32, #tpu.memory_space<vmem>>, vector<1x1x384xf32>
    %14 = vector.shape_cast %13 : vector<1x1x384xf32> to vector<1x384xf32>
    %15 = vector.broadcast %14 : vector<1x384xf32> to vector<64x384xf32>
    %16 = arith.addf %12, %15 : vector<64x384xf32>
    %17 = vector.extract_strided_slice %16 {offsets = [0, 0], sizes = [64, 128], strides = [1, 1]} : vector<64x384xf32> to vector<64x128xf32>
    %18 = arith.negf %17 : vector<64x128xf32>
    %19 = math.exp %18 : vector<64x128xf32>
    %cst_13 = arith.constant 1.000000e+00 : f32
    %20 = vector.broadcast %cst_13 : f32 to vector<64x128xf32>
    %21 = arith.addf %20, %19 : vector<64x128xf32>
    %22 = arith.divf %20, %21 : vector<64x128xf32>
    %23 = vector.extract_strided_slice %16 {offsets = [0, 256], sizes = [64, 128], strides = [1, 1]} : vector<64x384xf32> to vector<64x128xf32>
    %24 = math.tanh %23 : vector<64x128xf32>
    %cst_14 = arith.constant 1.000000e+00 : f32
    %25 = vector.broadcast %cst_14 : f32 to vector<64x128xf32>
    %26 = arith.subf %25, %22 : vector<64x128xf32>
    %27 = arith.mulf %26, %24 : vector<64x128xf32>
    %cst_15 = arith.constant 0.000000e+00 : f32
    %28 = vector.broadcast %cst_15 : f32 to vector<64x128xf32>
    %29 = arith.maximumf %27, %28 : vector<64x128xf32>
    %30 = arith.truncf %29 : vector<64x128xf32> to vector<64x128xbf16>
    %c1 = arith.constant 1 : index
    %c0_16 = arith.constant 0 : index
    %c0_17 = arith.constant 0 : index
    %31 = vector.load %arg4[%c1, %c0_16, %c0_17] : memref<2x128x384xbf16, #tpu.memory_space<vmem>>, vector<1x128x384xbf16>
    %32 = vector.shape_cast %31 : vector<1x128x384xbf16> to vector<128x384xbf16>
    %cst_18 = arith.constant dense<0.000000e+00> : vector<64x384xf32>
    %33 = tpu.matmul %30, %32, %cst_18 {dimension_numbers = #tpu.dot_dimension_numbers<[1], [0], [0], [1], [0, 0, 1, 1], [], []>} : vector<64x128xbf16>, vector<128x384xbf16>, vector<64x384xf32> -> vector<64x384xf32>
    %c1_19 = arith.constant 1 : index
    %c0_20 = arith.constant 0 : index
    %c0_21 = arith.constant 0 : index
    %34 = vector.load %arg5[%c1_19, %c0_20, %c0_21] : memref<2x1x384xf32, #tpu.memory_space<vmem>>, vector<1x1x384xf32>
    %35 = vector.shape_cast %34 : vector<1x1x384xf32> to vector<1x384xf32>
    %36 = vector.broadcast %35 : vector<1x384xf32> to vector<64x384xf32>
    %37 = arith.addf %33, %36 : vector<64x384xf32>
    %38 = vector.extract_strided_slice %37 {offsets = [0, 0], sizes = [64, 128], strides = [1, 1]} : vector<64x384xf32> to vector<64x128xf32>
    %39 = arith.negf %38 : vector<64x128xf32>
    %40 = math.exp %39 : vector<64x128xf32>
    %cst_22 = arith.constant 1.000000e+00 : f32
    %41 = vector.broadcast %cst_22 : f32 to vector<64x128xf32>
    %42 = arith.addf %41, %40 : vector<64x128xf32>
    %43 = arith.divf %41, %42 : vector<64x128xf32>
    %44 = vector.extract_strided_slice %37 {offsets = [0, 256], sizes = [64, 128], strides = [1, 1]} : vector<64x384xf32> to vector<64x128xf32>
    %45 = math.tanh %44 : vector<64x128xf32>
    %cst_23 = arith.constant 1.000000e+00 : f32
    %46 = vector.broadcast %cst_23 : f32 to vector<64x128xf32>
    %47 = arith.subf %46, %43 : vector<64x128xf32>
    %48 = arith.mulf %47, %45 : vector<64x128xf32>
    %cst_24 = arith.constant 0.000000e+00 : f32
    %49 = vector.broadcast %cst_24 : f32 to vector<64x128xf32>
    %50 = arith.maximumf %48, %49 : vector<64x128xf32>
    %c0_25 = arith.constant 0 : index
    %c0_26 = arith.constant 0 : index
    %51 = vector.load %arg6[%c0_25, %c0_26] : memref<64x128xf32, #tpu.memory_space<vmem>>, vector<64x128xf32>
    tpu.vector_store %arg6[%c0_25, %c0_26], %50 {strides = array<i32>} : memref<64x128xf32, #tpu.memory_space<vmem>>, vector<64x128xf32>,
    return
  }
  func.func @transform_0(%arg0: i32) -> (i32, i32) {
    %c0_i32 = arith.constant 0 : i32
    %c0_i32_0 = arith.constant 0 : i32
    return %arg0, %c0_i32 : i32, i32
  }
  func.func @transform_1(%arg0: i32) -> (i32, i32) {
    %c0_i32 = arith.constant 0 : i32
    %c0_i32_0 = arith.constant 0 : i32
    %c0_i32_1 = arith.constant 0 : i32
    return %c0_i32, %c0_i32_0 : i32, i32
  }
  func.func @transform_2(%arg0: i32) -> (i32, i32) {
    %c0_i32 = arith.constant 0 : i32
    %c0_i32_0 = arith.constant 0 : i32
    %c0_i32_1 = arith.constant 0 : i32
    return %c0_i32, %c0_i32_0 : i32, i32
  }
  func.func @transform_3(%arg0: i32) -> (i32, i32, i32) {
    %c0_i32 = arith.constant 0 : i32
    %c0_i32_0 = arith.constant 0 : i32
    %c0_i32_1 = arith.constant 0 : i32
    %c0_i32_2 = arith.constant 0 : i32
    return %c0_i32, %c0_i32_0, %c0_i32_1 : i32, i32, i32
  }
  func.func @transform_4(%arg0: i32) -> (i32, i32, i32) {
    %c0_i32 = arith.constant 0 : i32
    %c0_i32_0 = arith.constant 0 : i32
    %c0_i32_1 = arith.constant 0 : i32
    %c0_i32_2 = arith.constant 0 : i32
    return %c0_i32, %c0_i32_0, %c0_i32_1 : i32, i32, i32
  }
  func.func @transform_5(%arg0: i32) -> (i32, i32) {
    %c0_i32 = arith.constant 0 : i32
    %c0_i32_0 = arith.constant 0 : i32
    return %arg0, %c0_i32 : i32, i32
  }
}

</mosaic_0001>

<bundles_post_ra>
// kernel: tpu_custom_call.1
= control target key start
LH: loop header
LB: loop body
LE: loop exit
PB: predicated region body
PF: predicated region fallthrough
CT: control target
= control target key end

     0   :  { %6 = vsyncpa [#allocation3], 0  ;;  %s114_s0 = inlined_call_operand.hbm [shape: f32[8,128], index: 0, kind: input, shape index: {}]   ;;  %s115_s1 = inlined_call_operand.hbm [shape: f32[8,128], index: 1, kind: output, shape index: {}]  }
   0x1   :  { %7 = vsyncpa [#allocation4], 0  ;;  %s13_s8 = sshll.u32 %s114_s0, 4  ;;  %s96_s9 = smov [#allocation2]   ;;  %s14_s8 = int_to_ptr.hbm [resolvable:$true] %s13_s8 }
   0x2   :  { %s15_s10 = sshll.u32 %s96_s9, 4  ;;  %s16_s10 = int_to_ptr.vmem [resolvable:$true] %s15_s10 }
   0x3   :  { %18 = dma.hbm_to_vmem [thread:$0]  %s14_s8, 128, %s16_s10, [#allocation3]  }
   0x4   :  { %92 = dma.done.wait [#allocation3], 128  }
   0x5   :  { %93 = vsyncadd [#allocation3], 4294967168  ;;  %s97_s11 = smov [#allocation5]   ;;  %s32_s15 = sshll.u32 %s115_s1, 4  ;;  %v23_v0 = vld [vmem:[#allocation2] sm:$0xff]  ;;  %s33_s15 = int_to_ptr.hbm [resolvable:$true] %s32_s15 }
   0x6   :  { %s30_s12 = sshll.u32 %s97_s11, 4  ;;  %24 = vst [vmem:[#allocation5] sm:$0xff] %v23_v0  ;;  %s31_s12 = int_to_ptr.vmem [resolvable:$true] %s30_s12 }
   0x7   :  { %35 = dma.vmem_to_hbm [thread:$0]  %s31_s12, 128, %s33_s15, [#allocation4]  }
   0x8   :  { %94 = dma.done.wait [#allocation4], 128  }
   0x9   :  { %95 = vsyncadd [#allocation4], 4294967168 }
   0xa   :  { %40 = vsyncpa [#allocation3], 1 }
   0xb   :  { %41 = vsyncpa [#allocation4], 1 }

// kernel: _gcrn_forward.3
= control target key start
LH: loop header
LB: loop body
LE: loop exit
PB: predicated region body
PF: predicated region fallthrough
CT: control target
= control target key end

     0   :  { %s223_s2 = inlined_call_operand.vmem [shape: bf16[128,128], index: 2, kind: input, shape index: {}]   ;;  %s224_s3 = inlined_call_operand.vmem [shape: f32[1,128], index: 3, kind: input, shape index: {}]   ;;  %s225_s0 = inlined_call_operand.vmem [shape: f32[16,128], index: 0, kind: input, shape index: {}]   ;;  %s226_s1 = inlined_call_operand.vmem [shape: f32[16,128], index: 1, kind: input, shape index: {}]   ;;  %s227_s4 = inlined_call_operand.vmem [shape: f32[16,128], index: 4, kind: output, shape index: {}]  }
   0x1   :  { %v151_v0 = vld [vmem:[%s223_s2 + $0x38] sm:$0xff]  ;;  %v150_v1 = vld [vmem:[%s223_s2 + $0x30] sm:$0xff]  ;;  %v149_v2 = vld [vmem:[%s223_s2 + $0x28] sm:$0xff] }
   0x2   :  { %92 = vmatpush.bf16.msra.mxu0 %v151_v0  ;;  %v148_v3 = vld [vmem:[%s223_s2 + $0x20] sm:$0xff]  ;;  %v147_v4 = vld [vmem:[%s223_s2 + $0x18] sm:$0xff]  ;;  %v146_v5 = vld [vmem:[%s223_s2 + $0x10] sm:$0xff] }
   0x3   :  { %v145_v6 = vld [vmem:[%s223_s2 + $0x8] sm:$0xff]  ;;  %v17_v7 = vld [vmem:[%s225_s0] sm:$0xff] }
   0x4   :  { %v18_v8 = vld [vmem:[%s225_s0 + $0x8] sm:$0xff]  ;;  %v19_v9 = vld [vmem:[%s226_s1] sm:$0xff] }
   0x5   :  { %v20_v10 = vld [vmem:[%s226_s1 + $0x8] sm:$0xff]  ;;  %v21_v11 = vmul.f32 %v19_v9, %v17_v7  ;;  %v144_v13 = vld [vmem:[%s223_s2] sm:$0xff] }
   0x6   :  { %93 = vmatpush.bf16.msra.mxu0 %v150_v1  ;;  %v22_v12 = vmul.f32 %v20_v10, %v18_v8  ;;  %v152_v15 = vld [vmem:[%s224_s3] ss:$0 sm:$0xff] }
   0x8   :  { %v23_v14 = vpack.c.bf16 %v22_v12, %v21_v11 }
   0xa   :  { %94 = vmatpush.bf16.msra.mxu0 %v149_v2 }
   0xe   :  { %95 = vmatpush.bf16.msra.mxu0 %v148_v3 }
  0x12   :  { %96 = vmatpush.bf16.msra.mxu0 %v147_v4 }
  0x16   :  { %97 = vmatpush.bf16.msra.mxu0 %v146_v5 }
  0x1a   :  { %98 = vmatpush.bf16.msra.mxu0 %v145_v6 }
  0x1e   :  { %99 = vmatpush.bf16.msra.mxu0 %v144_v13 }
  0x21   :  { %100 = vmatmul.bf16.vlgmr.msra.gmra.mxu0 %v23_v14 }
  0x9e   :  { %v101_v16 = vpop.f32.mrf.mxu0 }
  0x9f   :  { %v102_v17 = vadd.f32 %v152_v15, %v101_v16 }
  0xa1   :  { %106 = vst [vmem:[%s227_s4] sm:$0xff] %v102_v17 }
  0xa6   :  { %v103_v18 = vpop.f32.mrf.mxu0 }
  0xa7   :  { %v104_v19 = vadd.f32 %v152_v15, %v103_v18 }
  0xa9   :  { %107 = vst [vmem:[%s227_s4 + $0x8] sm:$0xff] %v104_v19 }

// kernel: _gcrn_forward.2
= control target key start
LH: loop header
LB: loop body
LE: loop exit
PB: predicated region body
PF: predicated region fallthrough
CT: control target
= control target key end

     0   :  { %vm51_vm0 = vcmask 1043456   ;;  %vm38_vm1 = vcmask 64512   ;;  %s1537_s1 = inlined_call_operand.vmem [shape: bf16[8,128], index: 1, kind: input, shape index: {}]   ;;  %s1538_s0 = inlined_call_operand.vmem [shape: f32[64,8], index: 0, kind: input, shape index: {}]   ;;  %s1539_s3 = inlined_call_operand.vmem [shape: bf16[2,128,384], index: 3, kind: input, shape index: {}]   ;;  %s1540_s2 = inlined_call_operand.vmem [shape: f32[1,128], index: 2, kind: input, shape index: {}]   ;;  %s1541_s4 = inlined_call_operand.vmem [shape: f32[2,1,384], index: 4, kind: input, shape index: {}]   ;;  %s1542_s5 = inlined_call_operand.vmem [shape: f32[64,128], index: 5, kind: output, shape index: {}]  }
   0x1   :  { %v33_v0 = vld [vmem:[%s1537_s1] sm:$0xf]  ;;  %v22_v2 = vld [vmem:[%s1538_s0 + $0x8] sm:$0xff]  ;;  %v1061_v9 = vld [vmem:[%s1539_s3 + $0xb0] sm:$0xf0] }
   0x2   :  { %v21_v1 = vld [vmem:[%s1538_s0] sm:$0xff]  ;;  %v53_v3 = vsel %vm51_vm0, %v33_v0, 0  ;;  %v26_v6 = vld [vmem:[%s1538_s0 + $0x28] sm:$0xff]  ;;  %v932_v10 = vld [vmem:[%s1539_s3 + $0xb0] sm:$0xf] }
   0x3   :  { %v29_v4 = vpack.c.bf16 %v22_v2, %v21_v1  ;;  %v25_v5 = vld [vmem:[%s1538_s0 + $0x20] sm:$0xff]  ;;  %62 = vmatpush.bf16.msra.mxu0 %v53_v3  ;;  %1079 = vmatpush.bf16.msra.mxu1 %v53_v3  ;;  %v928_v8 = vld [vmem:[%s1539_s3 + $0xa8] sm:$0xf]  ;;  %v1062_v12 = vld [vmem:[%s1539_s3 + $0xb8] sm:$0xf0] }
   0x4   :  { %v31_v7 = vpack.c.bf16 %v26_v6, %v25_v5  ;;  %v929_v11 = vor.u32 %v1061_v9, %v928_v8  ;;  %v920_v13 = vld [vmem:[%s1539_s3 + $0x90] sm:$0xf]  ;;  %v1059_v14 = vld [vmem:[%s1539_s3 + $0x98] sm:$0xf0]  ;;  %v933_v15 = vor.u32 %v1062_v12, %v932_v10  ;;  %v924_v16 = vld [vmem:[%s1539_s3 + $0x98] sm:$0xf] }
   0x5   :  { %v1060_v17 = vld [vmem:[%s1539_s3 + $0xa0] sm:$0xf0]  ;;  %v921_v18 = vor.u32 %v1059_v14, %v920_v13  ;;  %v912_v20 = vld [vmem:[%s1539_s3 + $0x78] sm:$0xf]  ;;  %v916_v22 = vld [vmem:[%s1539_s3 + $0x80] sm:$0xf] }
   0x6   :  { %866 = vmatmul.msk.bf16.vlgmr.msra.gmra.mxu0 %vm38_vm1, %v29_v4  ;;  %868 = vmatmul.msk.bf16.vlgmr.msra.gmra.mxu1 %vm38_vm1, %v31_v7  ;;  %v925_v19 = vor.u32 %v1060_v17, %v924_v16  ;;  %v1057_v21 = vld [vmem:[%s1539_s3 + $0x80] sm:$0xf0]  ;;  %v1058_v23 = vld [vmem:[%s1539_s3 + $0x88] sm:$0xf0]  ;;  %v904_v26 = vld [vmem:[%s1539_s3 + $0x60] sm:$0xf] }
   0x7   :  { %230 = vmatpush.bf16.msrb.mxu1 %v929_v11  ;;  %259 = vmatpush.bf16.msra.mxu2 %v933_v15  ;;  %v913_v24 = vor.u32 %v1057_v21, %v912_v20  ;;  %v917_v25 = vor.u32 %v1058_v23, %v916_v22  ;;  %v1055_v27 = vld [vmem:[%s1539_s3 + $0x68] sm:$0xf0]  ;;  %v908_v28 = vld [vmem:[%s1539_s3 + $0x68] sm:$0xf]  ;;  %v1056_v29 = vld [vmem:[%s1539_s3 + $0x70] sm:$0xf0] }
   0x8   :  { %v23_v30 = vld [vmem:[%s1538_s0 + $0x10] sm:$0xff]  ;;  %v24_v31 = vld [vmem:[%s1538_s0 + $0x18] sm:$0xff]  ;;  %v905_v34 = vor.u32 %v1055_v27, %v904_v26  ;;  %v909_v35 = vor.u32 %v1056_v29, %v908_v28  ;;  %v896_v36 = vld [vmem:[%s1539_s3 + $0x48] sm:$0xf] }
   0x9   :  { %v27_v32 = vld [vmem:[%s1538_s0 + $0x30] sm:$0xff]  ;;  %v28_v33 = vld [vmem:[%s1538_s0 + $0x38] sm:$0xff]  ;;  %v30_v38 = vpack.c.bf16 %v24_v31, %v23_v30  ;;  %v1052_v48 = vld [vmem:[%s1539_s3 + $0x40] sm:$0xf0] }
   0xa   :  { %v1053_v37 = vld [vmem:[%s1539_s3 + $0x50] sm:$0xf0]  ;;  %v32_v39 = vpack.c.bf16 %v28_v33, %v27_v32  ;;  %v900_v41 = vld [vmem:[%s1539_s3 + $0x50] sm:$0xf]  ;;  %v1054_v42 = vld [vmem:[%s1539_s3 + $0x58] sm:$0xf0] }
   0xb   :  { %231 = vmatpush.bf16.msrb.mxu1 %v921_v18  ;;  %260 = vmatpush.bf16.msra.mxu2 %v925_v19  ;;  %v897_v40 = vor.u32 %v1053_v37, %v896_v36  ;;  %v901_v43 = vor.u32 %v1054_v42, %v900_v41  ;;  %v888_v44 = vld [vmem:[%s1539_s3 + $0x30] sm:$0xf]  ;;  %v1051_v45 = vld [vmem:[%s1539_s3 + $0x38] sm:$0xf0]  ;;  %v892_v46 = vld [vmem:[%s1539_s3 + $0x38] sm:$0xf] }
   0xc   :  { %v889_v47 = vor.u32 %v1051_v45, %v888_v44  ;;  %v893_v49 = vor.u32 %v1052_v48, %v892_v46  ;;  %v880_v50 = vld [vmem:[%s1539_s3 + $0x18] sm:$0xf]  ;;  %v1049_v51 = vld [vmem:[%s1539_s3 + $0x20] sm:$0xf0]  ;;  %v884_v53 = vld [vmem:[%s1539_s3 + $0x20] sm:$0xf] }
   0xd   :  { %v881_v52 = vor.u32 %v1049_v51, %v880_v50  ;;  %v1050_v54 = vld [vmem:[%s1539_s3 + $0x28] sm:$0xf0]  ;;  %v872_v56 = vld [vmem:[%s1539_s3] sm:$0xf]  ;;  %v876_v58 = vld [vmem:[%s1539_s3 + $0x8] sm:$0xf] }
   0xe   :  { %v885_v55 = vor.u32 %v1050_v54, %v884_v53  ;;  %v1047_v57 = vld [vmem:[%s1539_s3 + $0x8] sm:$0xf0]  ;;  %v1048_v60 = vld [vmem:[%s1539_s3 + $0x10] sm:$0xf0]  ;;  %v1080_v63 = vld [vmem:[%s1540_s2] ss:$0 sm:$0xff] }
   0xf   :  { %232 = vmatpush.bf16.msrb.mxu1 %v913_v24  ;;  %261 = vmatpush.bf16.msra.mxu2 %v917_v25  ;;  %v873_v59 = vor.u32 %v1047_v57, %v872_v56  ;;  %v877_v61 = vor.u32 %v1048_v60, %v876_v58  ;;  %v1033_v27 = vld [vmem:[%s1539_s3 + $0x168] sm:$0xf]  ;;  %v1077_v28 = vld [vmem:[%s1539_s3 + $0x170] sm:$0xf0]  ;;  %v1037_v29 = vld [vmem:[%s1539_s3 + $0x170] sm:$0xf] }
  0x10   :  { %v1034_v30 = vor.u32 %v1077_v28, %v1033_v27  ;;  %v1078_v31 = vld [vmem:[%s1539_s3 + $0x178] sm:$0xf0]  ;;  %v1025_v33 = vld [vmem:[%s1539_s3 + $0x150] sm:$0xf]  ;;  %v1076_v37 = vld [vmem:[%s1539_s3 + $0x160] sm:$0xf0] }
  0x11   :  { %v1038_v32 = vor.u32 %v1078_v31, %v1037_v29  ;;  %v1021_v41 = vld [vmem:[%s1539_s3 + $0x140] sm:$0xf]  ;;  %v1013_v48 = vld [vmem:[%s1539_s3 + $0x128] sm:$0xf]  ;;  %v1072_v50 = vld [vmem:[%s1539_s3 + $0x130] sm:$0xf0] }
  0x12   :  { %612 = vmatpush.bf16.msra.mxu3 %v1034_v30  ;;  %v1376_v45 = vld [vmem:[%s1541_s4] sm:$0x7]  ;;  %v1014_v51 = vor.u32 %v1072_v50, %v1013_v48  ;;  %v1001_v53 = vld [vmem:[%s1539_s3 + $0x108] sm:$0xf]  ;;  %v1069_v54 = vld [vmem:[%s1539_s3 + $0x110] sm:$0xf0] }
  0x13   :  { %233 = vmatpush.bf16.msrb.mxu1 %v905_v34  ;;  %262 = vmatpush.bf16.msra.mxu2 %v909_v35  ;;  %v1075_v34 = vld [vmem:[%s1539_s3 + $0x158] sm:$0xf0]  ;;  %v1029_v35 = vld [vmem:[%s1539_s3 + $0x158] sm:$0xf]  ;;  %v1009_v46 = vld [vmem:[%s1539_s3 + $0x120] sm:$0xf]  ;;  %v1002_v56 = vor.u32 %v1069_v54, %v1001_v53 }
  0x14   :  { %641 = vmatpush.bf16.msrb.mxu0 %v1038_v32  ;;  %v1026_v36 = vor.u32 %v1075_v34, %v1025_v33  ;;  %v1070_v57 = vld [vmem:[%s1539_s3 + $0x118] sm:$0xf0]  ;;  %v1445_v31 = vperm.slane %v1376_v45, 2 }
  0x16   :  { %867 = vmatmul.msk.bf16.gmra.mxu0 %vm38_vm1, %v30_v38  ;;  %869 = vmatmul.msk.bf16.gmra.mxu1 %vm38_vm1, %v32_v39  ;;  %v1030_v38 = vor.u32 %v1076_v37, %v1029_v35  ;;  %v1017_v39 = vld [vmem:[%s1539_s3 + $0x138] sm:$0xf] }
  0x17   :  { %234 = vmatpush.bf16.msrb.mxu1 %v897_v40  ;;  %263 = vmatpush.bf16.msra.mxu2 %v901_v43  ;;  %v1073_v40 = vld [vmem:[%s1539_s3 + $0x140] sm:$0xf0]  ;;  %v1074_v43 = vld [vmem:[%s1539_s3 + $0x148] sm:$0xf0] }
  0x18   :  { %613 = vmatpush.bf16.msra.mxu3 %v1026_v36  ;;  %642 = vmatpush.bf16.msrb.mxu0 %v1030_v38  ;;  %v1018_v42 = vor.u32 %v1073_v40, %v1017_v39  ;;  %v1022_v44 = vor.u32 %v1074_v43, %v1021_v41 }
  0x1b   :  { %235 = vmatpush.bf16.msrb.mxu1 %v889_v47  ;;  %264 = vmatpush.bf16.msra.mxu2 %v893_v49  ;;  %v1071_v47 = vld [vmem:[%s1539_s3 + $0x128] sm:$0xf0] }
  0x1c   :  { %614 = vmatpush.bf16.msra.mxu3 %v1018_v42  ;;  %643 = vmatpush.bf16.msrb.mxu0 %v1022_v44  ;;  %v1010_v49 = vor.u32 %v1071_v47, %v1009_v46 }
  0x1f   :  { %236 = vmatpush.bf16.msrb.mxu1 %v881_v52  ;;  %265 = vmatpush.bf16.msra.mxu2 %v885_v55  ;;  %v1391_v52 = vperm.slane %v1376_v45, 0  ;;  %v1005_v55 = vld [vmem:[%s1539_s3 + $0x110] sm:$0xf] }
  0x20   :  { %615 = vmatpush.bf16.msra.mxu3 %v1010_v49  ;;  %644 = vmatpush.bf16.msrb.mxu0 %v1014_v51  ;;  %v1006_v58 = vor.u32 %v1070_v57, %v1005_v55 }
  0x23   :  { %237 = vmatpush.bf16.msrb.mxu1 %v873_v59  ;;  %266 = vmatpush.bf16.msra.mxu2 %v877_v61  ;;  %v993_v61 = vld [vmem:[%s1539_s3 + $0xf0] sm:$0xf] }
  0x24   :  { %616 = vmatpush.bf16.msra.mxu3 %v1002_v56  ;;  %645 = vmatpush.bf16.msrb.mxu0 %v1006_v58 }
  0x83   :  { %v64_v62 = vpop.f32.mrf.mxu0  ;;  %v74_v7 = vpop.f32.mrf.mxu1 }
  0x84   :  { %v65_v0 = vadd.f32 %v1080_v63, %v64_v62  ;;  %v75_v15 = vadd.f32 %v1080_v63, %v74_v7  ;;  %v1067_v62 = vld [vmem:[%s1539_s3 + $0xf8] sm:$0xf0] }
  0x86   :  { %v84_v3 = vmax.f32 %v65_v0, 0.0  ;;  %v88_v18 = vmax.f32 %v75_v15, 0.0  ;;  %v994_v0 = vor.u32 %v1067_v62, %v993_v61  ;;  %v981_v15 = vld [vmem:[%s1539_s3 + $0xc8] sm:$0xf] }
  0x88   :  { %617 = vmatpush.bf16.msra.mxu3 %v994_v0 }
  0x8b   :  { %v66_v1 = vpop.f32.mrf.mxu0  ;;  %v76_v14 = vpop.f32.mrf.mxu1 }
  0x8c   :  { %v67_v2 = vadd.f32 %v1080_v63, %v66_v1  ;;  %v77_v16 = vadd.f32 %v1080_v63, %v76_v14  ;;  %v1068_v1 = vld [vmem:[%s1539_s3 + $0x100] sm:$0xf0]  ;;  %v1063_v14 = vld [vmem:[%s1539_s3 + $0xc8] sm:$0xf0] }
  0x8e   :  { %v85_v4 = vmax.f32 %v67_v2, 0.0  ;;  %v89_v19 = vmax.f32 %v77_v16, 0.0 }
  0x90   :  { %v92_v5 = vpack.c.bf16 %v85_v4, %v84_v3  ;;  %v94_v20 = vpack.c.bf16 %v89_v19, %v88_v18  ;;  %v985_v4 = vld [vmem:[%s1539_s3 + $0xd8] sm:$0xf] }
  0x92   :  { %238 = vmatmul.bf16.vlgmr.msrb.gmra.mxu1 %v92_v5  ;;  %267 = vmatmul.bf16.vlgmr.msra.gmra.mxu2 %v92_v5  ;;  %v1065_v5 = vld [vmem:[%s1539_s3 + $0xe0] sm:$0xf0] }
  0x93   :  { %v69_v6 = vpop.f32.mrf.mxu0  ;;  %v79_v17 = vpop.f32.mrf.mxu1 }
  0x94   :  { %v70_v8 = vadd.f32 %v1080_v63, %v69_v6  ;;  %v80_v22 = vadd.f32 %v1080_v63, %v79_v17  ;;  %v989_v6 = vld [vmem:[%s1539_s3 + $0xe0] sm:$0xf]  ;;  %v1064_v17 = vld [vmem:[%s1539_s3 + $0xd0] sm:$0xf0] }
  0x96   :  { %v86_v11 = vmax.f32 %v70_v8, 0.0  ;;  %v90_v24 = vmax.f32 %v80_v22, 0.0  ;;  %v986_v8 = vor.u32 %v1065_v5, %v985_v4 }
  0x98   :  { %618 = vmatpush.bf16.msra.mxu3 %v986_v8 }
  0x9b   :  { %v71_v9 = vpop.f32.mrf.mxu0  ;;  %v81_v21 = vpop.f32.mrf.mxu1 }
  0x9c   :  { %v72_v10 = vadd.f32 %v1080_v63, %v71_v9  ;;  %v82_v23 = vadd.f32 %v1080_v63, %v81_v21  ;;  %v997_v63 = vld [vmem:[%s1539_s3 + $0xf8] sm:$0xf]  ;;  %v1066_v9 = vld [vmem:[%s1539_s3 + $0xe8] sm:$0xf0] }
  0x9d   :  { %v998_v3 = vor.u32 %v1068_v1, %v997_v63 }
  0x9e   :  { %v87_v12 = vmax.f32 %v72_v10, 0.0  ;;  %v91_v25 = vmax.f32 %v82_v23, 0.0  ;;  %v990_v10 = vor.u32 %v1066_v9, %v989_v6 }
  0x9f   :  { %646 = vmatpush.bf16.msrb.mxu0 %v998_v3 }
  0xa0   :  { %v93_v13 = vpack.c.bf16 %v87_v12, %v86_v11  ;;  %v95_v26 = vpack.c.bf16 %v91_v25, %v90_v24 }
  0xa2   :  { %243 = vmatmul.bf16.gmra.mxu1 %v93_v13  ;;  %272 = vmatmul.bf16.gmra.mxu2 %v93_v13  ;;  %v977_v13 = vld [vmem:[%s1539_s3 + $0xc0] sm:$0xf] }
  0xa3   :  { %647 = vmatpush.bf16.msrb.mxu0 %v990_v10  ;;  %v978_v16 = vor.u32 %v1063_v14, %v977_v13 }
  0xa5   :  { %619 = vmatpush.bf16.msra.mxu3 %v978_v16 }
  0xb2   :  { %248 = vmatmul.bf16.gmra.mxu1 %v94_v20  ;;  %277 = vmatmul.bf16.gmra.mxu2 %v94_v20  ;;  %v982_v20 = vor.u32 %v1064_v17, %v981_v15 }
  0xb4   :  { %648 = vmatpush.bf16.msrb.mxu0 %v982_v20 }
  0xc2   :  { %253 = vmatmul.bf16.gmra.mxu1 %v95_v26  ;;  %282 = vmatmul.bf16.gmra.mxu2 %v95_v26 }
 0x10f   :  { %v239_v59 = vpop.f32.mrf.mxu1 }
 0x110   :  { %v240_v60 = vadd.f32 %v239_v59, %v1391_v52 }
 0x112   :  { %v934_v2 = vmul.f32 -1.442695, %v240_v60 }
 0x114   :  { %1081 = vpow2.f32 %v934_v2 }
 0x115   :  { %v268_v7 = vpop.f32.mrf.mxu2 }
 0x116   :  { %v269_v42 = vadd.f32 %v268_v7, %v1445_v31 }
 0x117   :  { %v241_v11 = vpop.f32.mrf.mxu1 }
 0x118   :  { %v242_v12 = vadd.f32 %v241_v11, %v1391_v52 }
 0x11a   :  { %v1082_v18 = vpop.eup %1081  ;;  %v935_v19 = vmul.f32 -1.442695, %v242_v12 }
 0x11b   :  { %v312_v21 = vadd.f32 1.0, %v1082_v18 }
 0x11c   :  { %1083 = vpow2.f32 %v935_v19 }
 0x11d   :  { %1085 = vrcp.f32 %v312_v21  ;;  %v270_v22 = vpop.f32.mrf.mxu2  ;;  %v331_v36 = vand.u32 2147483648, %v312_v21  ;;  %vm325_vm3 = vweird.f32 %v312_v21  ;;  %v329_v40 = vand.u32 2147483647, %v312_v21 }
 0x11e   :  { %v271_v46 = vadd.f32 %v270_v22, %v1445_v31 }
 0x11f   :  { %v244_v23 = vpop.f32.mrf.mxu1  ;;  %v332_v47 = vor.u32 1.1754944e-38, %v331_v36  ;;  %vm330_vm5 = vcmp.eq.f32.partialorder %v329_v40, 8.507059e+37 }
 0x120   :  { %v245_v24 = vadd.f32 %v244_v23, %v1391_v52 }
 0x122   :  { %v1084_v25 = vpop.eup %1083  ;;  %v936_v26 = vmul.f32 -1.442695, %v245_v24 }
 0x123   :  { %v1086_v27 = vpop.eup %1085  ;;  %v313_v28 = vadd.f32 1.0, %v1084_v25 }
 0x124   :  { %v321_v29 = vmul.f32 %v1086_v27, %v312_v21  ;;  %1087 = vpow2.f32 %v936_v26  ;;  %vm326_vm2 = vweird.f32 %v1086_v27 }
 0x125   :  { %1089 = vrcp.f32 %v313_v28  ;;  %v1447_v33 = vpop.f32.mrf.mxu2  ;;  %vm327_vm4 = vmor %vm325_vm3, %vm326_vm2  ;;  %v346_v51 = vand.u32 2147483648, %v313_v28  ;;  %v344_v55 = vand.u32 2147483647, %v313_v28  ;;  %vm340_vm7 = vweird.f32 %v313_v28 }
 0x126   :  { %v322_v30 = vsub.f32 1.0, %v321_v29  ;;  %v274_v20 = vadd.f32 %v1447_v33, %v1445_v31 }
 0x127   :  { %v246_v32 = vpop.f32.mrf.mxu1  ;;  %v347_v63 = vor.u32 1.1754944e-38, %v346_v51  ;;  %vm345_vm9 = vcmp.eq.f32.partialorder %v344_v55, 8.507059e+37 }
 0x128   :  { %v247_v34 = vadd.f32 %v246_v32, %v1391_v52  ;;  %v323_v35 = vmul.f32 %v1086_v27, %v322_v30 }
 0x12a   :  { %v1088_v37 = vpop.eup %1087  ;;  %v937_v38 = vmul.f32 -1.442695, %v247_v34  ;;  %v324_v39 = vadd.f32 %v1086_v27, %v323_v35 }
 0x12b   :  { %v1090_v41 = vpop.eup %1089  ;;  %v1451_v43 = vadd.f32 1.0, %v1088_v37 }
 0x12c   :  { %v336_v44 = vmul.f32 %v1090_v41, %v313_v28  ;;  %1091 = vpow2.f32 %v937_v38  ;;  %v328_v45 = vsel %vm327_vm4, %v1086_v27, %v324_v39  ;;  %vm341_vm6 = vweird.f32 %v1090_v41 }
 0x12d   :  { %1093 = vrcp.f32 %v1451_v43  ;;  %v333_v50 = vsel %vm330_vm5, %v332_v47, %v328_v45  ;;  %v275_v57 = vpop.f32.mrf.mxu2  ;;  %vm342_vm8 = vmor %vm340_vm7, %vm341_vm6  ;;  %vm355_vm11 = vweird.f32 %v1451_v43  ;;  %v359_v12 = vand.u32 2147483647, %v1451_v43 }
 0x12e   :  { %v337_v48 = vsub.f32 1.0, %v336_v44  ;;  %1095 = vtanh.f32 %v269_v42  ;;  %v448_v60 = vsub.f32 1.0, %v333_v50  ;;  %v361_v13 = vand.u32 2147483648, %v1451_v43 }
 0x12f   :  { %v249_v49 = vpop.f32.mrf.mxu1  ;;  %1097 = vtanh.f32 %v271_v46  ;;  %v276_v27 = vadd.f32 %v275_v57, %v1445_v31  ;;  %vm360_vm13 = vcmp.eq.f32.partialorder %v359_v12, 8.507059e+37 }
 0x130   :  { %v250_v53 = vadd.f32 %v249_v49, %v1391_v52  ;;  %v338_v54 = vmul.f32 %v1090_v41, %v337_v48  ;;  %v362_v28 = vor.u32 1.1754944e-38, %v361_v13 }
 0x132   :  { %v1092_v56 = vpop.eup %1091  ;;  %v938_v58 = vmul.f32 -1.442695, %v250_v53  ;;  %v339_v59 = vadd.f32 %v1090_v41, %v338_v54 }
 0x133   :  { %v1094_v61 = vpop.eup %1093  ;;  %v1456_v62 = vadd.f32 1.0, %v1092_v56 }
 0x134   :  { %v351_v0 = vmul.f32 %v1094_v61, %v1451_v43  ;;  %1099 = vpow2.f32 %v938_v58  ;;  %v343_v1 = vsel %vm342_vm8, %v1090_v41, %v339_v59  ;;  %v1096_v2 = vpop.eup %1095  ;;  %vm356_vm10 = vweird.f32 %v1094_v61 }
 0x135   :  { %1101 = vrcp.f32 %v1456_v62  ;;  %v348_v3 = vsel %vm345_vm9, %v347_v63, %v343_v1  ;;  %v456_v6 = vmul.f32 %v1096_v2, %v448_v60  ;;  %v1098_v7 = vpop.eup %1097  ;;  %vm1468_vm12 = vmor %vm355_vm11, %vm356_vm10  ;;  %v278_v24 = vpop.f32.mrf.mxu2  ;;  %v376_v33 = vand.u32 2147483648, %v1456_v62 }
 0x136   :  { %v352_v4 = vsub.f32 1.0, %v351_v0  ;;  %v449_v5 = vsub.f32 1.0, %v348_v3  ;;  %v374_v36 = vand.u32 2147483647, %v1456_v62  ;;  %vm370_vm15 = vweird.f32 %v1456_v62 }
 0x137   :  { %v251_v8 = vpop.f32.mrf.mxu1  ;;  %v464_v16 = vmax.f32 %v456_v6, 0.0  ;;  %v377_v43 = vor.u32 1.1754944e-38, %v376_v33  ;;  %v279_v2 = vadd.f32 %v278_v24, %v1445_v31 }
 0x138   :  { %v252_v9 = vadd.f32 %v251_v8, %v1391_v52  ;;  %v457_v10 = vmul.f32 %v1098_v7, %v449_v5  ;;  %v353_v11 = vmul.f32 %v1094_v61, %v352_v4  ;;  %vm375_vm1 = vcmp.eq.f32.partialorder %v374_v36, 8.507059e+37 }
 0x13a   :  { %v1100_v14 = vpop.eup %1099  ;;  %v939_v15 = vmul.f32 -1.442695, %v252_v9  ;;  %v465_v17 = vmax.f32 %v457_v10, 0.0  ;;  %v354_v18 = vadd.f32 %v1094_v61, %v353_v11 }
 0x13b   :  { %v1102_v19 = vpop.eup %1101  ;;  %v1466_v21 = vadd.f32 1.0, %v1100_v14 }
 0x13c   :  { %v366_v23 = vmul.f32 %v1102_v19, %v1456_v62  ;;  %1103 = vpow2.f32 %v939_v15  ;;  %v472_v25 = vpack.c.bf16 %v465_v17, %v464_v16  ;;  %v358_v26 = vsel %vm1468_vm12, %v1094_v61, %v354_v18 }
 0x13d   :  { %1105 = vrcp.f32 %v1466_v21  ;;  %v363_v32 = vsel %vm360_vm13, %v362_v28, %v358_v26  ;;  %vm371_vm14 = vweird.f32 %v1102_v19  ;;  %v280_v49 = vpop.f32.mrf.mxu2  ;;  %vm385_vm3 = vweird.f32 %v1466_v21 }
 0x13e   :  { %v367_v29 = vsub.f32 1.0, %v366_v23  ;;  %620 = vmatmul.bf16.vlgmr.msra.gmra.mxu3 %v472_v25  ;;  %649 = vmatmul.bf16.vlgmr.msrb.gmra.mxu0 %v472_v25  ;;  %1107 = vtanh.f32 %v274_v20  ;;  %v450_v40 = vsub.f32 1.0, %v363_v32  ;;  %vm372_vm0 = vmor %vm370_vm15, %vm371_vm14  ;;  %v389_v58 = vand.u32 2147483647, %v1466_v21 }
 0x13f   :  { %v254_v30 = vpop.f32.mrf.mxu1  ;;  %1109 = vtanh.f32 %v276_v27  ;;  %v391_v59 = vand.u32 2147483648, %v1466_v21  ;;  %v281_v6 = vadd.f32 %v280_v49, %v1445_v31 }
 0x140   :  { %v255_v34 = vadd.f32 %v254_v30, %v1391_v52  ;;  %v368_v35 = vmul.f32 %v1102_v19, %v367_v29  ;;  %vm390_vm5 = vcmp.eq.f32.partialorder %v389_v58, 8.507059e+37 }
 0x141   :  { %v392_v7 = vor.u32 1.1754944e-38, %v391_v59 }
 0x142   :  { %v1104_v37 = vpop.eup %1103  ;;  %v940_v38 = vmul.f32 -1.442695, %v255_v34  ;;  %v369_v39 = vadd.f32 %v1102_v19, %v368_v35 }
 0x143   :  { %v1106_v41 = vpop.eup %1105  ;;  %v317_v42 = vadd.f32 1.0, %v1104_v37 }
 0x144   :  { %v381_v44 = vmul.f32 %v1106_v41, %v1466_v21  ;;  %1111 = vpow2.f32 %v940_v38  ;;  %v373_v45 = vsel %vm372_vm0, %v1102_v19, %v369_v39  ;;  %v1108_v46 = vpop.eup %1107  ;;  %vm386_vm2 = vweird.f32 %v1106_v41 }
 0x145   :  { %1113 = vrcp.f32 %v317_v42  ;;  %v378_v47 = vsel %vm375_vm1, %v377_v43, %v373_v45  ;;  %v458_v51 = vmul.f32 %v1108_v46, %v450_v40  ;;  %v1110_v53 = vpop.eup %1109  ;;  %vm387_vm4 = vmor %vm385_vm3, %vm386_vm2  ;;  %v406_v10 = vand.u32 2147483648, %v317_v42  ;;  %v283_v11 = vpop.f32.mrf.mxu2 }
 0x146   :  { %v382_v48 = vsub.f32 1.0, %v381_v44  ;;  %v451_v50 = vsub.f32 1.0, %v378_v47  ;;  %v404_v13 = vand.u32 2147483647, %v317_v42  ;;  %vm400_vm7 = vweird.f32 %v317_v42 }
 0x147   :  { %v256_v54 = vpop.f32.mrf.mxu1  ;;  %v466_v62 = vmax.f32 %v458_v51, 0.0  ;;  %v407_v19 = vor.u32 1.1754944e-38, %v406_v10  ;;  %v284_v38 = vadd.f32 %v283_v11, %v1445_v31 }
 0x148   :  { %v257_v55 = vadd.f32 %v256_v54, %v1391_v52  ;;  %v459_v56 = vmul.f32 %v1110_v53, %v451_v50  ;;  %v383_v57 = vmul.f32 %v1106_v41, %v382_v48  ;;  %vm405_vm9 = vcmp.eq.f32.partialorder %v404_v13, 8.507059e+37 }
 0x14a   :  { %v1112_v60 = vpop.eup %1111  ;;  %v941_v61 = vmul.f32 -1.442695, %v257_v55  ;;  %v467_v63 = vmax.f32 %v459_v56, 0.0  ;;  %v384_v0 = vadd.f32 %v1106_v41, %v383_v57 }
 0x14b   :  { %v1114_v1 = vpop.eup %1113  ;;  %v318_v3 = vadd.f32 1.0, %v1112_v60 }
 0x14c   :  { %v396_v52 = vmul.f32 %v1114_v1, %v317_v42  ;;  %1115 = vpow2.f32 %v941_v61  ;;  %v473_v4 = vpack.c.bf16 %v467_v63, %v466_v62  ;;  %v388_v5 = vsel %vm387_vm4, %v1106_v41, %v384_v0  ;;  %v974_v62 = vld [vmem:[%s1541_s4 + $0x3] sm:$0x7] }
 0x14d   :  { %1117 = vrcp.f32 %v318_v3  ;;  %v393_v9 = vsel %vm390_vm5, %v392_v7, %v388_v5  ;;  %vm401_vm6 = vweird.f32 %v1114_v1  ;;  %vm415_vm11 = vweird.f32 %v318_v3  ;;  %v285_v32 = vpop.f32.mrf.mxu2 }
 0x14e   :  { %v397_v8 = vsub.f32 1.0, %v396_v52  ;;  %625 = vmatmul.bf16.gmra.mxu3 %v473_v4  ;;  %654 = vmatmul.bf16.gmra.mxu0 %v473_v4  ;;  %1119 = vtanh.f32 %v279_v2  ;;  %v452_v16 = vsub.f32 1.0, %v393_v9  ;;  %vm402_vm8 = vmor %vm400_vm7, %vm401_vm6  ;;  %v421_v30 = vand.u32 2147483648, %v318_v3 }
 0x14f   :  { %1121 = vtanh.f32 %v281_v6  ;;  %v419_v36 = vand.u32 2147483647, %v318_v3  ;;  %v286_v42 = vadd.f32 %v285_v32, %v1445_v31  ;;  %v1493_v63 = vperm.slane %v974_v62, 0 }
 0x150   :  { %v398_v12 = vmul.f32 %v1114_v1, %v397_v8  ;;  %v422_v43 = vor.u32 1.1754944e-38, %v421_v30  ;;  %v1498_v11 = vperm.slane %v974_v62, 2 }
 0x151   :  { %vm420_vm13 = vcmp.eq.f32.partialorder %v419_v36, 8.507059e+37 }
 0x152   :  { %v1116_v14 = vpop.eup %1115  ;;  %v399_v15 = vadd.f32 %v1114_v1, %v398_v12 }
 0x153   :  { %v1118_v17 = vpop.eup %1117  ;;  %v319_v18 = vadd.f32 1.0, %v1116_v14 }
 0x154   :  { %v411_v20 = vmul.f32 %v1118_v17, %v318_v3  ;;  %v403_v21 = vsel %vm402_vm8, %v1114_v1, %v399_v15  ;;  %v1120_v22 = vpop.eup %1119  ;;  %vm416_vm10 = vweird.f32 %v1118_v17 }
 0x155   :  { %1123 = vrcp.f32 %v319_v18  ;;  %v408_v23 = vsel %vm405_vm9, %v407_v19, %v403_v21  ;;  %v460_v26 = vmul.f32 %v1120_v22, %v452_v16  ;;  %v1122_v27 = vpop.eup %1121  ;;  %vm417_vm12 = vmor %vm415_vm11, %vm416_vm10  ;;  %v436_v46 = vand.u32 2147483648, %v319_v18 }
 0x156   :  { %v412_v24 = vsub.f32 1.0, %v411_v20  ;;  %v453_v25 = vsub.f32 1.0, %v408_v23  ;;  %1125 = vtanh.f32 %v284_v38  ;;  %v434_v48 = vand.u32 2147483647, %v319_v18 }
 0x157   :  { %v468_v33 = vmax.f32 %v460_v26, 0.0  ;;  %1127 = vtanh.f32 %v286_v42  ;;  %vm430_vm15 = vweird.f32 %v319_v18  ;;  %v437_v51 = vor.u32 1.1754944e-38, %v436_v46 }
 0x158   :  { %v461_v28 = vmul.f32 %v1122_v27, %v453_v25  ;;  %v413_v29 = vmul.f32 %v1118_v17, %v412_v24  ;;  %vm435_vm1 = vcmp.eq.f32.partialorder %v434_v48, 8.507059e+37 }
 0x15a   :  { %v469_v34 = vmax.f32 %v461_v28, 0.0  ;;  %v414_v35 = vadd.f32 %v1118_v17, %v413_v29 }
 0x15b   :  { %v1124_v37 = vpop.eup %1123 }
 0x15c   :  { %v426_v39 = vmul.f32 %v1124_v37, %v319_v18  ;;  %v474_v40 = vpack.c.bf16 %v469_v34, %v468_v33  ;;  %v418_v41 = vsel %vm417_vm12, %v1118_v17, %v414_v35  ;;  %vm431_vm14 = vweird.f32 %v1124_v37  ;;  %v1126_v31 = vpop.eup %1125 }
 0x15d   :  { %v423_v45 = vsel %vm420_vm13, %v422_v43, %v418_v41  ;;  %vm432_vm0 = vmor %vm430_vm15, %vm431_vm14  ;;  %v1128_v57 = vpop.eup %1127 }
 0x15e   :  { %v427_v44 = vsub.f32 1.0, %v426_v39  ;;  %630 = vmatmul.bf16.gmra.mxu3 %v474_v40  ;;  %659 = vmatmul.bf16.gmra.mxu0 %v474_v40  ;;  %v454_v50 = vsub.f32 1.0, %v423_v45 }
 0x160   :  { %v428_v47 = vmul.f32 %v1124_v37, %v427_v44  ;;  %v462_v56 = vmul.f32 %v1126_v31, %v454_v50 }
 0x162   :  { %v429_v49 = vadd.f32 %v1124_v37, %v428_v47  ;;  %v470_v59 = vmax.f32 %v462_v56, 0.0 }
 0x164   :  { %v433_v53 = vsel %vm432_vm0, %v1124_v37, %v429_v49 }
 0x165   :  { %v438_v54 = vsel %vm435_vm1, %v437_v51, %v433_v53 }
 0x166   :  { %v455_v55 = vsub.f32 1.0, %v438_v54 }
 0x168   :  { %v463_v58 = vmul.f32 %v1128_v57, %v455_v55 }
 0x16a   :  { %v471_v60 = vmax.f32 %v463_v58, 0.0 }
 0x16c   :  { %v475_v61 = vpack.c.bf16 %v471_v60, %v470_v59 }
 0x16e   :  { %635 = vmatmul.bf16.gmra.mxu3 %v475_v61  ;;  %664 = vmatmul.bf16.gmra.mxu0 %v475_v61 }
 0x1bb   :  { %v650_v3 = vpop.f32.mrf.mxu0 }
 0x1bc   :  { %v651_v17 = vadd.f32 %v650_v3, %v1498_v11 }
 0x1c1   :  { %v621_v0 = vpop.f32.mrf.mxu3 }
 0x1c2   :  { %v622_v1 = vadd.f32 %v621_v0, %v1493_v63 }
 0x1c3   :  { %v652_v8 = vpop.f32.mrf.mxu0 }
 0x1c4   :  { %v1039_v2 = vmul.f32 -1.442695, %v622_v1  ;;  %v653_v35 = vadd.f32 %v652_v8, %v1498_v11 }
 0x1c6   :  { %1129 = vpow2.f32 %v1039_v2 }
 0x1c9   :  { %v623_v52 = vpop.f32.mrf.mxu3 }
 0x1ca   :  { %v624_v4 = vadd.f32 %v623_v52, %v1493_v63 }
 0x1cb   :  { %v655_v23 = vpop.f32.mrf.mxu0 }
 0x1cc   :  { %v1130_v5 = vpop.eup %1129  ;;  %v1040_v6 = vmul.f32 -1.442695, %v624_v4  ;;  %v656_v56 = vadd.f32 %v655_v23, %v1498_v11 }
 0x1cd   :  { %v694_v7 = vadd.f32 1.0, %v1130_v5 }
 0x1ce   :  { %1131 = vpow2.f32 %v1040_v6 }
 0x1cf   :  { %1133 = vrcp.f32 %v694_v7  ;;  %v713_v19 = vand.u32 2147483648, %v694_v7  ;;  %v711_v22 = vand.u32 2147483647, %v694_v7  ;;  %vm707_vm3 = vweird.f32 %v694_v7 }
 0x1d1   :  { %v626_v9 = vpop.f32.mrf.mxu3  ;;  %v714_v29 = vor.u32 1.1754944e-38, %v713_v19  ;;  %vm712_vm5 = vcmp.eq.f32.partialorder %v711_v22, 8.507059e+37 }
 0x1d2   :  { %v627_v10 = vadd.f32 %v626_v9, %v1493_v63 }
 0x1d3   :  { %v657_v48 = vpop.f32.mrf.mxu0 }
 0x1d4   :  { %v1132_v12 = vpop.eup %1131  ;;  %v1041_v13 = vmul.f32 -1.442695, %v627_v10 }
 0x1d5   :  { %v1134_v14 = vpop.eup %1133  ;;  %v695_v15 = vadd.f32 1.0, %v1132_v12 }
 0x1d6   :  { %v703_v16 = vmul.f32 %v1134_v14, %v694_v7  ;;  %1135 = vpow2.f32 %v1041_v13  ;;  %vm708_vm2 = vweird.f32 %v1134_v14 }
 0x1d7   :  { %1137 = vrcp.f32 %v695_v15  ;;  %vm709_vm4 = vmor %vm707_vm3, %vm708_vm2  ;;  %v726_v39 = vand.u32 2147483647, %v695_v15  ;;  %v728_v40 = vand.u32 2147483648, %v695_v15  ;;  %vm722_vm7 = vweird.f32 %v695_v15 }
 0x1d8   :  { %v704_v18 = vsub.f32 1.0, %v703_v16  ;;  %1139 = vtanh.f32 %v651_v17 }
 0x1d9   :  { %v628_v20 = vpop.f32.mrf.mxu3  ;;  %v729_v51 = vor.u32 1.1754944e-38, %v728_v40  ;;  %vm727_vm9 = vcmp.eq.f32.partialorder %v726_v39, 8.507059e+37 }
 0x1da   :  { %v705_v21 = vmul.f32 %v1134_v14, %v704_v18  ;;  %v629_v24 = vadd.f32 %v628_v20, %v1493_v63 }
 0x1db   :  { %v660_v12 = vpop.f32.mrf.mxu0 }
 0x1dc   :  { %v1136_v25 = vpop.eup %1135  ;;  %v706_v26 = vadd.f32 %v1134_v14, %v705_v21  ;;  %v1042_v27 = vmul.f32 -1.442695, %v629_v24 }
 0x1dd   :  { %v1138_v28 = vpop.eup %1137  ;;  %v696_v30 = vadd.f32 1.0, %v1136_v25 }
 0x1de   :  { %v710_v32 = vsel %vm709_vm4, %v1134_v14, %v706_v26  ;;  %v718_v33 = vmul.f32 %v1138_v28, %v695_v15  ;;  %1141 = vpow2.f32 %v1042_v27  ;;  %v1140_v38 = vpop.eup %1139  ;;  %vm723_vm6 = vweird.f32 %v1138_v28 }
 0x1df   :  { %v715_v34 = vsel %vm712_vm5, %v714_v29, %v710_v32  ;;  %1143 = vrcp.f32 %v696_v30  ;;  %vm724_vm8 = vmor %vm722_vm7, %vm723_vm6  ;;  %v741_v60 = vand.u32 2147483647, %v696_v30  ;;  %v743_v61 = vand.u32 2147483648, %v696_v30 }
 0x1e0   :  { %v830_v36 = vsub.f32 1.0, %v715_v34  ;;  %v719_v37 = vsub.f32 1.0, %v718_v33  ;;  %1145 = vtanh.f32 %v653_v35  ;;  %vm737_vm11 = vweird.f32 %v696_v30 }
 0x1e1   :  { %v631_v41 = vpop.f32.mrf.mxu3  ;;  %v744_v7 = vor.u32 1.1754944e-38, %v743_v61  ;;  %vm742_vm13 = vcmp.eq.f32.partialorder %v741_v60, 8.507059e+37  ;;  %v658_v14 = vadd.f32 %v657_v48, %v1498_v11  ;;  %v661_v35 = vadd.f32 %v660_v12, %v1498_v11 }
 0x1e2   :  { %v838_v42 = vmul.f32 %v1140_v38, %v830_v36  ;;  %v720_v43 = vmul.f32 %v1138_v28, %v719_v37  ;;  %v632_v44 = vadd.f32 %v631_v41, %v1493_v63 }
 0x1e3   :  { %v662_v38 = vpop.f32.mrf.mxu0 }
 0x1e4   :  { %v1142_v45 = vpop.eup %1141  ;;  %v846_v46 = vmax.f32 %v838_v42, 0.0  ;;  %v721_v47 = vadd.f32 %v1138_v28, %v720_v43  ;;  %v1043_v49 = vmul.f32 -1.442695, %v632_v44 }
 0x1e5   :  { %v1144_v50 = vpop.eup %1143  ;;  %v697_v53 = vadd.f32 1.0, %v1142_v45 }
 0x1e6   :  { %854 = vst [vmem:[%s1542_s5] sm:$0xff] %v846_v46  ;;  %v725_v31 = vsel %vm724_vm8, %v1138_v28, %v721_v47  ;;  %v733_v54 = vmul.f32 %v1144_v50, %v696_v30  ;;  %1147 = vpow2.f32 %v1043_v49  ;;  %v1146_v59 = vpop.eup %1145  ;;  %vm738_vm10 = vweird.f32 %v1144_v50 }
 0x1e7   :  { %v730_v55 = vsel %vm727_vm9, %v729_v51, %v725_v31  ;;  %1149 = vrcp.f32 %v697_v53  ;;  %vm739_vm12 = vmor %vm737_vm11, %vm738_vm10  ;;  %v756_v18 = vand.u32 2147483647, %v697_v53  ;;  %v758_v19 = vand.u32 2147483648, %v697_v53 }
 0x1e8   :  { %v831_v57 = vsub.f32 1.0, %v730_v55  ;;  %v734_v58 = vsub.f32 1.0, %v733_v54  ;;  %1151 = vtanh.f32 %v656_v56  ;;  %vm752_vm15 = vweird.f32 %v697_v53 }
 0x1e9   :  { %v633_v62 = vpop.f32.mrf.mxu3  ;;  %v759_v29 = vor.u32 1.1754944e-38, %v758_v19  ;;  %vm757_vm1 = vcmp.eq.f32.partialorder %v756_v18, 8.507059e+37 }
 0x1ea   :  { %v839_v0 = vmul.f32 %v1146_v59, %v831_v57  ;;  %v735_v1 = vmul.f32 %v1144_v50, %v734_v58  ;;  %v634_v2 = vadd.f32 %v633_v62, %v1493_v63 }
 0x1ec   :  { %v1148_v3 = vpop.eup %1147  ;;  %v847_v52 = vmax.f32 %v839_v0, 0.0  ;;  %v736_v4 = vadd.f32 %v1144_v50, %v735_v1  ;;  %v1044_v5 = vmul.f32 -1.442695, %v634_v2  ;;  %v665_v0 = vpop.f32.mrf.mxu0 }
 0x1ed   :  { %v1150_v6 = vpop.eup %1149  ;;  %v698_v8 = vadd.f32 1.0, %v1148_v3 }
 0x1ee   :  { %855 = vst [vmem:[%s1542_s5 + $0x8] sm:$0xff] %v847_v52  ;;  %v740_v9 = vsel %vm739_vm12, %v1144_v50, %v736_v4  ;;  %v748_v10 = vmul.f32 %v1150_v6, %v697_v53  ;;  %1153 = vpow2.f32 %v1044_v5  ;;  %v1152_v17 = vpop.eup %1151  ;;  %vm753_vm14 = vweird.f32 %v1150_v6 }
 0x1ef   :  { %v745_v13 = vsel %vm742_vm13, %v744_v7, %v740_v9  ;;  %1155 = vrcp.f32 %v698_v8  ;;  %vm754_vm0 = vmor %vm752_vm15, %vm753_vm14  ;;  %v771_v40 = vand.u32 2147483647, %v698_v8  ;;  %v773_v41 = vand.u32 2147483648, %v698_v8 }
 0x1f0   :  { %v832_v15 = vsub.f32 1.0, %v745_v13  ;;  %v749_v16 = vsub.f32 1.0, %v748_v10  ;;  %1157 = vtanh.f32 %v658_v14  ;;  %vm767_vm3 = vweird.f32 %v698_v8 }
 0x1f1   :  { %v636_v20 = vpop.f32.mrf.mxu3  ;;  %v774_v51 = vor.u32 1.1754944e-38, %v773_v41  ;;  %vm772_vm5 = vcmp.eq.f32.partialorder %v771_v40, 8.507059e+37  ;;  %v666_v9 = vadd.f32 %v665_v0, %v1498_v11 }
 0x1f2   :  { %v840_v21 = vmul.f32 %v1152_v17, %v832_v15  ;;  %v750_v22 = vmul.f32 %v1150_v6, %v749_v16  ;;  %v637_v23 = vadd.f32 %v636_v20, %v1493_v63 }
 0x1f4   :  { %v1154_v24 = vpop.eup %1153  ;;  %v848_v25 = vmax.f32 %v840_v21, 0.0  ;;  %v751_v26 = vadd.f32 %v1150_v6, %v750_v22  ;;  %v1045_v27 = vmul.f32 -1.442695, %v637_v23  ;;  %v667_v20 = vpop.f32.mrf.mxu0 }
 0x1f5   :  { %v1156_v28 = vpop.eup %1155  ;;  %v699_v30 = vadd.f32 1.0, %v1154_v24 }
 0x1f6   :  { %856 = vst [vmem:[%s1542_s5 + $0x10] sm:$0xff] %v848_v25  ;;  %v755_v32 = vsel %vm754_vm0, %v1150_v6, %v751_v26  ;;  %v763_v33 = vmul.f32 %v1156_v28, %v698_v8  ;;  %1159 = vpow2.f32 %v1045_v27  ;;  %v1158_v39 = vpop.eup %1157  ;;  %vm768_vm2 = vweird.f32 %v1156_v28 }
 0x1f7   :  { %v760_v34 = vsel %vm757_vm1, %v759_v29, %v755_v32  ;;  %1161 = vrcp.f32 %v699_v30  ;;  %vm769_vm4 = vmor %vm767_vm3, %vm768_vm2  ;;  %v788_v59 = vand.u32 2147483648, %v699_v30  ;;  %v786_v62 = vand.u32 2147483647, %v699_v30 }
 0x1f8   :  { %v833_v36 = vsub.f32 1.0, %v760_v34  ;;  %v764_v37 = vsub.f32 1.0, %v763_v33  ;;  %1163 = vtanh.f32 %v661_v35  ;;  %vm782_vm7 = vweird.f32 %v699_v30 }
 0x1f9   :  { %v638_v42 = vpop.f32.mrf.mxu3  ;;  %v789_v4 = vor.u32 1.1754944e-38, %v788_v59  ;;  %vm787_vm9 = vcmp.eq.f32.partialorder %v786_v62, 8.507059e+37  ;;  %v668_v26 = vadd.f32 %v667_v20, %v1498_v11 }
 0x1fa   :  { %v841_v43 = vmul.f32 %v1158_v39, %v833_v36  ;;  %v765_v44 = vmul.f32 %v1156_v28, %v764_v37  ;;  %v639_v45 = vadd.f32 %v638_v42, %v1493_v63  ;;  %v663_v63 = vadd.f32 %v662_v38, %v1498_v11 }
 0x1fc   :  { %v1160_v46 = vpop.eup %1159  ;;  %v849_v47 = vmax.f32 %v841_v43, 0.0  ;;  %v766_v48 = vadd.f32 %v1156_v28, %v765_v44  ;;  %v1046_v49 = vmul.f32 -1.442695, %v639_v45 }
 0x1fd   :  { %v1162_v50 = vpop.eup %1161  ;;  %v700_v53 = vadd.f32 1.0, %v1160_v46 }
 0x1fe   :  { %857 = vst [vmem:[%s1542_s5 + $0x18] sm:$0xff] %v849_v47  ;;  %v770_v31 = vsel %vm769_vm4, %v1156_v28, %v766_v48  ;;  %v778_v54 = vmul.f32 %v1162_v50, %v699_v30  ;;  %1165 = vpow2.f32 %v1046_v49  ;;  %v1164_v58 = vpop.eup %1163  ;;  %vm783_vm6 = vweird.f32 %v1162_v50 }
 0x1ff   :  { %v775_v55 = vsel %vm772_vm5, %v774_v51, %v770_v31  ;;  %1167 = vrcp.f32 %v700_v53  ;;  %vm784_vm8 = vmor %vm782_vm7, %vm783_vm6  ;;  %v803_v14 = vand.u32 2147483648, %v700_v53  ;;  %v801_v17 = vand.u32 2147483647, %v700_v53 }
 0x200   :  { %v834_v56 = vsub.f32 1.0, %v775_v55  ;;  %v779_v57 = vsub.f32 1.0, %v778_v54  ;;  %1169 = vtanh.f32 %v663_v63  ;;  %vm797_vm11 = vweird.f32 %v700_v53 }
 0x201   :  { %v804_v22 = vor.u32 1.1754944e-38, %v803_v14  ;;  %vm802_vm13 = vcmp.eq.f32.partialorder %v801_v17, 8.507059e+37 }
 0x202   :  { %v842_v60 = vmul.f32 %v1164_v58, %v834_v56  ;;  %v780_v61 = vmul.f32 %v1162_v50, %v779_v57 }
 0x204   :  { %v1166_v1 = vpop.eup %1165  ;;  %v850_v2 = vmax.f32 %v842_v60, 0.0  ;;  %v781_v3 = vadd.f32 %v1162_v50, %v780_v61 }
 0x205   :  { %v1168_v52 = vpop.eup %1167  ;;  %v701_v5 = vadd.f32 1.0, %v1166_v1 }
 0x206   :  { %858 = vst [vmem:[%s1542_s5 + $0x20] sm:$0xff] %v850_v2  ;;  %v785_v6 = vsel %vm784_vm8, %v1162_v50, %v781_v3  ;;  %v793_v7 = vmul.f32 %v1168_v52, %v700_v53  ;;  %v1170_v13 = vpop.eup %1169  ;;  %vm798_vm10 = vweird.f32 %v1168_v52 }
 0x207   :  { %v790_v8 = vsel %vm787_vm9, %v789_v4, %v785_v6  ;;  %1171 = vrcp.f32 %v701_v5  ;;  %vm799_vm12 = vmor %vm797_vm11, %vm798_vm10  ;;  %v818_v30 = vand.u32 2147483648, %v701_v5  ;;  %v816_v34 = vand.u32 2147483647, %v701_v5 }
 0x208   :  { %v835_v10 = vsub.f32 1.0, %v790_v8  ;;  %v794_v12 = vsub.f32 1.0, %v793_v7  ;;  %1173 = vtanh.f32 %v666_v9  ;;  %vm812_vm15 = vweird.f32 %v701_v5 }
 0x209   :  { %1175 = vtanh.f32 %v668_v26  ;;  %v819_v37 = vor.u32 1.1754944e-38, %v818_v30  ;;  %vm817_vm1 = vcmp.eq.f32.partialorder %v816_v34, 8.507059e+37 }
 0x20a   :  { %v843_v15 = vmul.f32 %v1170_v13, %v835_v10  ;;  %v795_v16 = vmul.f32 %v1168_v52, %v794_v12 }
 0x20c   :  { %v851_v18 = vmax.f32 %v843_v15, 0.0  ;;  %v796_v19 = vadd.f32 %v1168_v52, %v795_v16 }
 0x20d   :  { %v1172_v21 = vpop.eup %1171 }
 0x20e   :  { %859 = vst [vmem:[%s1542_s5 + $0x28] sm:$0xff] %v851_v18  ;;  %v800_v23 = vsel %vm799_vm12, %v1168_v52, %v796_v19  ;;  %v808_v24 = vmul.f32 %v1172_v21, %v701_v5  ;;  %v1174_v29 = vpop.eup %1173  ;;  %vm813_vm14 = vweird.f32 %v1172_v21 }
 0x20f   :  { %v805_v25 = vsel %vm802_vm13, %v804_v22, %v800_v23  ;;  %vm814_vm0 = vmor %vm812_vm15, %vm813_vm14  ;;  %v1176_v40 = vpop.eup %1175 }
 0x210   :  { %v836_v27 = vsub.f32 1.0, %v805_v25  ;;  %v809_v28 = vsub.f32 1.0, %v808_v24 }
 0x212   :  { %v844_v32 = vmul.f32 %v1174_v29, %v836_v27  ;;  %v810_v33 = vmul.f32 %v1172_v21, %v809_v28 }
 0x214   :  { %v852_v35 = vmax.f32 %v844_v32, 0.0  ;;  %v811_v36 = vadd.f32 %v1172_v21, %v810_v33 }
 0x216   :  { %860 = vst [vmem:[%s1542_s5 + $0x30] sm:$0xff] %v852_v35  ;;  %v815_v38 = vsel %vm814_vm0, %v1172_v21, %v811_v36 }
 0x217   :  { %v820_v11 = vsel %vm817_vm1, %v819_v37, %v815_v38 }
 0x218   :  { %v837_v39 = vsub.f32 1.0, %v820_v11 }
 0x21a   :  { %v845_v41 = vmul.f32 %v1176_v40, %v837_v39 }
 0x21c   :  { %v853_v42 = vmax.f32 %v845_v41, 0.0 }
 0x21e   :  { %861 = vst [vmem:[%s1542_s5 + $0x38] sm:$0xff] %v853_v42 }

</bundles_post_ra>
